<compile_context>
chip_gen: v5e
topology: v5e:2x2
jax: 0.10.0
libtpu: 0.0.40
codegen_flags: <defaults>
</compile_context>

<pallas_src>
import math

import jax
import jax.numpy as jnp
from jax.experimental import pallas as pl
from jax.experimental.pallas import tpu as pltpu

HIDDEN = 128            # hidden width of DQNModel (fixed by the PyTorch spec)
MEAN_COL = HIDDEN - 1   # fused-head column that yields mean(advantage)


# ----------------------------- Pallas kernel ------------------------------ #
def dqn_kernel(x_ref, w1_ref, ws_ref, b_ref, q_ref):
    """One batch tile of the full DQN forward.

    x_ref  : (TB, S)        bf16  input tile (S = state_size, un-padded)
    w1_ref : (S, 128)       bf16
    ws_ref : (3, 128, 128)  bf16  stacked [w2 ; w3(noisy, effective) ; fused head]
    b_ref  : (8, 128)       f32   stacked biases [b1; b2; b3; b_head; zeros]
    q_ref  : (TB, 128)      f32   lane-dense padded output; real q in cols 1..A
    """
    b1 = b_ref[0:1, :]
    b2 = b_ref[1:2, :]
    b3 = b_ref[2:3, :]
    bh = b_ref[3:4, :]

    # fc1 -> relu   (bf16 operands on the MXU, f32 accumulate + f32 elementwise)
    h = jnp.dot(x_ref[...], w1_ref[...], preferred_element_type=jnp.float32)
    h = jnp.maximum(h + b1, 0.0)
    # fc2 -> relu
    h = jnp.dot(h.astype(jnp.bfloat16), ws_ref[0],
                preferred_element_type=jnp.float32)
    h = jnp.maximum(h + b2, 0.0)
    # fc3 (noisy, effective weight) -> relu
    h = jnp.dot(h.astype(jnp.bfloat16), ws_ref[1],
                preferred_element_type=jnp.float32)
    h = jnp.maximum(h + b3, 0.0)
    # fused dueling head: one lane-dense matmul produces v, a and mean(a)
    head = jnp.dot(h.astype(jnp.bfloat16), ws_ref[2],
                   preferred_element_type=jnp.float32) + bh
    v = head[:, 0:1]                        # (TB, 1) value
    m = head[:, MEAN_COL:MEAN_COL + 1]      # (TB, 1) mean over the A real advantages
    # q = v + a - mean(a); computed across the whole 128-lane vreg, wrapper slices
    # the real advantage columns 1..A.
    q_ref[...] = (head + (v - m)).astype(q_ref.dtype)


# ------------------------------- wrapper ----------------------------------- #
def _round_up(n, m):
    return ((n + m - 1) // m) * m


def _pick_batch_tile(batch):
    """Adaptive batch tile.

    Small batches: one 16-aligned tile (bf16 sublane packing).  Larger batches:
    pick from {256,512,1024,2048} the tile that (a) keeps >=2 grid steps so the
    'parallel' axis shards across v7x's two TensorCores, (b) minimizes last-tile
    padding, (c) prefers bigger tiles (per-step overhead amortization).
    """
    if batch <= 256:
        return _round_up(max(batch, 1), 16)
    best_tb, best_key = None, None
    for tb in (256, 512, 1024, 2048):
        b_pad = _round_up(batch, tb)
        n_tiles = b_pad // tb
        key = (0 if n_tiles >= 2 else 1, b_pad - batch, -tb)
        if best_key is None or key < best_key:
            best_tb, best_key = tb, key
    return best_tb


def pack_params(params, state_size, action_size):
    """Repack module parameters into the kernel layout (plain JAX glue, done once)."""
    w1, b1, w2, b2, w3, b3, wa, ba, wv, bv = params
    assert action_size <= HIDDEN - 2, "fused head requires action_size <= 126"

    bf16 = jnp.bfloat16

    # fused dueling head weight/bias: [ value | advantages | 0...0 | mean(adv) ]
    # mean column is built from the bf16-rounded advantage weights so it matches
    # the bf16 advantage columns as closely as possible.
    wa_rounded = wa.astype(bf16).astype(jnp.float32)
    wh = jnp.zeros((HIDDEN, HIDDEN), jnp.float32)
    wh = wh.at[:, 0].set(wv[:, 0])
    wh = wh.at[:, 1:1 + action_size].set(wa)
    wh = wh.at[:, MEAN_COL].set(jnp.mean(wa_rounded, axis=1))
    bh = jnp.zeros((1, HIDDEN), jnp.float32)
    bh = bh.at[0, 0].set(bv[0, 0])
    bh = bh.at[0, 1:1 + action_size].set(ba[0])
    bh = bh.at[0, MEAN_COL].set(jnp.mean(ba))

    # stack w2 / w3 / fused head into one resident (3,128,128) bf16 operand
    w_stack = jnp.stack([w2, w3, wh], axis=0).astype(bf16)

    # stack all biases into one (8, 128) f32 operand (rows 0..3 used)
    b_stack = jnp.concatenate(
        [b1, b2, b3, bh, jnp.zeros((4, HIDDEN), jnp.float32)], axis=0)

    # fc1 weight un-padded (state_size, 128) in bf16
    return (w1.astype(bf16), w_stack, b_stack)


def dqn_forward(x, packed, action_size, out_dtype=jnp.float32):
    """Batch-tiled DQN forward via one pallas_call."""
    w1, w_stack, b_stack = packed
    B, k_state = x.shape
    assert w1.shape[0] == k_state

    tb = _pick_batch_tile(B)
    b_pad = _round_up(B, tb)

    # x in bf16 in HBM: half the input DMA bytes, no in-kernel pack pass.
    x_pad = jnp.zeros((b_pad, k_state), jnp.bfloat16).at[:B, :].set(
        x.astype(jnp.bfloat16))

    q_pad = pl.pallas_call(
        dqn_kernel,
        out_shape=jax.ShapeDtypeStruct((b_pad, HIDDEN), out_dtype),
        grid_spec=pltpu.PrefetchScalarGridSpec(
            num_scalar_prefetch=0,
            grid=(b_pad // tb,),
            in_specs=[
                # x tile: last dim equals full array dim (un-padded K), so the
                # (8,128) divisibility rule is satisfied.
                pl.BlockSpec((tb, k_state), lambda i: (i, 0)),
                pl.BlockSpec((k_state, HIDDEN), lambda i: (0, 0)),      # w1 (resident)
                pl.BlockSpec((3, HIDDEN, HIDDEN), lambda i: (0, 0, 0)),  # w2/w3/head
                pl.BlockSpec((8, HIDDEN), lambda i: (0, 0)),             # biases
            ],
            out_specs=pl.BlockSpec((tb, HIDDEN), lambda i: (i, 0)),
        ),
        compiler_params=pltpu.CompilerParams(
            # shard batch tiles over v7x's 2 TCs (no-op on v5e/v6e)
            dimension_semantics=("parallel",),
            # explicit budget: safe for tb=2048 double-buffered under v7x 64 MiB
            vmem_limit_bytes=24 * 1024 * 1024,
        ),
    )(x_pad, w1, w_stack, b_stack)

    # real q values live in columns 1..A of the lane-dense padded output
    return q_pad[:B, 1:1 + action_size]


# --------------------------- parameter building ---------------------------- #
def scale_noise(key, size):
    """Factorized gaussian noise: sign(x) * sqrt(|x|)."""
    x = jax.random.normal(key, (size,), dtype=jnp.float32)
    return jnp.sign(x) * jnp.sqrt(jnp.abs(x))


def init_linear(key, in_f, out_f):
    """nn.Linear-style init; returns (W[in,out], b[1,out])."""
    k_w, k_b = jax.random.split(key)
    bound = 1.0 / math.sqrt(in_f)
    w = jax.random.uniform(k_w, (in_f, out_f), jnp.float32, -bound, bound)
    b = jax.random.uniform(k_b, (1, out_f), jnp.float32, -bound, bound)
    return w, b


def init_noisy_linear(key, in_f, out_f, std_init=0.5):
    """NoisyLinear effective weights: (mu + sigma*eps). Returns (W[in,out], b[1,out])."""
    k_wmu, k_bmu, k_ein, k_eout = jax.random.split(key, 4)
    mu_range = 1.0 / math.sqrt(in_f)
    weight_mu = jax.random.uniform(k_wmu, (out_f, in_f), jnp.float32, -mu_range, mu_range)
    bias_mu = jax.random.uniform(k_bmu, (out_f,), jnp.float32, -mu_range, mu_range)
    weight_sigma = jnp.full((out_f, in_f), std_init / math.sqrt(in_f), jnp.float32)
    bias_sigma = jnp.full((out_f,), std_init / math.sqrt(out_f), jnp.float32)
    eps_in = scale_noise(k_ein, in_f)
    eps_out = scale_noise(k_eout, out_f)
    weight_eps = jnp.outer(eps_out, eps_in)
    bias_eps = eps_out
    w_eff = weight_mu + weight_sigma * weight_eps        # (out, in)
    b_eff = bias_mu + bias_sigma * bias_eps              # (out,)
    return w_eff.T, b_eff.reshape(1, out_f)


def init_dqn_params(key, state_size, action_size, hidden=HIDDEN):
    keys = jax.random.split(key, 5)
    w1, b1 = init_linear(keys[0], state_size, hidden)
    w2, b2 = init_linear(keys[1], hidden, hidden)
    w3, b3 = init_noisy_linear(keys[2], hidden, hidden)
    wa, ba = init_noisy_linear(keys[3], hidden, action_size)
    wv, bv = init_noisy_linear(keys[4], hidden, 1)
    return (w1, b1, w2, b2, w3, b3, wa, ba, wv, bv)


# ------------------------------ reference ---------------------------------- #
def dqn_forward_ref(x, params):
    w1, b1, w2, b2, w3, b3, wa, ba, wv, bv = params
    h = jnp.maximum(x @ w1 + b1, 0.0)
    h = jnp.maximum(h @ w2 + b2, 0.0)
    h = jnp.maximum(h @ w3 + b3, 0.0)
    v = h @ wv + bv
    a = h @ wa + ba
    return v + a - jnp.mean(a, axis=-1, keepdims=True)


if __name__ == "__main__":
    key = jax.random.PRNGKey(0)
    k_params, k_x = jax.random.split(key)

    batch = 2
    state_size = 16
    action_size = 4

    params = init_dqn_params(k_params, state_size, action_size)
    x = jax.random.normal(k_x, (batch, state_size), dtype=jnp.float32)

    packed = pack_params(params, state_size, action_size)
    q = dqn_forward(x, packed, action_size)
    jax.block_until_ready(q)

    q_ref = dqn_forward_ref(x, params)
    assert q.shape == (batch, action_size)
    # bf16 MXU operands / bf16 inputs with f32 accumulation -> loosened tolerance
    assert jnp.allclose(q, q_ref, atol=5e-2, rtol=5e-2), "mismatch vs reference"

    print("KERNEL_OK")
</pallas_src>

<mosaic_0001>
module attributes {stable_mosaic.version = 11 : i64} {
  func.func @dqn_kernel(%arg0: i32, %arg1: memref<16x16xbf16, #tpu.memory_space<vmem>>, %arg2: memref<16x128xbf16, #tpu.memory_space<vmem>>, %arg3: memref<3x128x128xbf16, #tpu.memory_space<vmem>>, %arg4: memref<8x128xf32, #tpu.memory_space<vmem>>, %arg5: memref<16x128xf32, #tpu.memory_space<vmem>>) attributes {dimension_semantics = [#tpu.dimension_semantics<parallel>], iteration_bounds = array<i64: 1>, scalar_prefetch = 0 : i64, scratch_operands = 0 : i64, tpu.core_type = #tpu.core_type<tc>, window_params = [{transform_indices = @transform_0, window_bounds = array<i64: 16, 16>}, {pipeline_mode = #tpu.pipeline_mode<synchronous>, transform_indices = @transform_1, window_bounds = array<i64: 16, 128>}, {pipeline_mode = #tpu.pipeline_mode<synchronous>, transform_indices = @transform_2, window_bounds = array<i64: 3, 128, 128>}, {pipeline_mode = #tpu.pipeline_mode<synchronous>, transform_indices = @transform_3, window_bounds = array<i64: 8, 128>}, {transform_indices = @transform_4, window_bounds = array<i64: 16, 128>}]} {
    %c0 = arith.constant 0 : index
    %c0_0 = arith.constant 0 : index
    %0 = vector.load %arg4[%c0, %c0_0] : memref<8x128xf32, #tpu.memory_space<vmem>>, vector<1x128xf32>
    %c1 = arith.constant 1 : index
    %c0_1 = arith.constant 0 : index
    %1 = vector.load %arg4[%c1, %c0_1] : memref<8x128xf32, #tpu.memory_space<vmem>>, vector<1x128xf32>
    %c2 = arith.constant 2 : index
    %c0_2 = arith.constant 0 : index
    %2 = vector.load %arg4[%c2, %c0_2] : memref<8x128xf32, #tpu.memory_space<vmem>>, vector<1x128xf32>
    %c3 = arith.constant 3 : index
    %c0_3 = arith.constant 0 : index
    %3 = vector.load %arg4[%c3, %c0_3] : memref<8x128xf32, #tpu.memory_space<vmem>>, vector<1x128xf32>
    %c0_4 = arith.constant 0 : index
    %c0_5 = arith.constant 0 : index
    %4 = vector.load %arg1[%c0_4, %c0_5] : memref<16x16xbf16, #tpu.memory_space<vmem>>, vector<16x16xbf16>
    %c0_6 = arith.constant 0 : index
    %c0_7 = arith.constant 0 : index
    %5 = vector.load %arg2[%c0_6, %c0_7] : memref<16x128xbf16, #tpu.memory_space<vmem>>, vector<16x128xbf16>
    %cst = arith.constant dense<0.000000e+00> : vector<16x128xf32>
    %6 = tpu.matmul %4, %5, %cst {dimension_numbers = #tpu.dot_dimension_numbers<[1], [0], [0], [1], [0, 0, 1, 1], [], []>} : vector<16x16xbf16>, vector<16x128xbf16>, vector<16x128xf32> -> vector<16x128xf32>
    %7 = vector.broadcast %0 : vector<1x128xf32> to vector<16x128xf32>
    %8 = arith.addf %6, %7 : vector<16x128xf32>
    %cst_8 = arith.constant 0.000000e+00 : f32
    %9 = vector.broadcast %cst_8 : f32 to vector<16x128xf32>
    %10 = arith.maximumf %8, %9 : vector<16x128xf32>
    %11 = arith.truncf %10 : vector<16x128xf32> to vector<16x128xbf16>
    %c0_9 = arith.constant 0 : index
    %c0_10 = arith.constant 0 : index
    %c0_11 = arith.constant 0 : index
    %12 = vector.load %arg3[%c0_9, %c0_10, %c0_11] : memref<3x128x128xbf16, #tpu.memory_space<vmem>>, vector<1x128x128xbf16>
    %13 = vector.shape_cast %12 : vector<1x128x128xbf16> to vector<128x128xbf16>
    %cst_12 = arith.constant dense<0.000000e+00> : vector<16x128xf32>
    %14 = tpu.matmul %11, %13, %cst_12 {dimension_numbers = #tpu.dot_dimension_numbers<[1], [0], [0], [1], [0, 0, 1, 1], [], []>} : vector<16x128xbf16>, vector<128x128xbf16>, vector<16x128xf32> -> vector<16x128xf32>
    %15 = vector.broadcast %1 : vector<1x128xf32> to vector<16x128xf32>
    %16 = arith.addf %14, %15 : vector<16x128xf32>
    %cst_13 = arith.constant 0.000000e+00 : f32
    %17 = vector.broadcast %cst_13 : f32 to vector<16x128xf32>
    %18 = arith.maximumf %16, %17 : vector<16x128xf32>
    %19 = arith.truncf %18 : vector<16x128xf32> to vector<16x128xbf16>
    %c1_14 = arith.constant 1 : index
    %c0_15 = arith.constant 0 : index
    %c0_16 = arith.constant 0 : index
    %20 = vector.load %arg3[%c1_14, %c0_15, %c0_16] : memref<3x128x128xbf16, #tpu.memory_space<vmem>>, vector<1x128x128xbf16>
    %21 = vector.shape_cast %20 : vector<1x128x128xbf16> to vector<128x128xbf16>
    %cst_17 = arith.constant dense<0.000000e+00> : vector<16x128xf32>
    %22 = tpu.matmul %19, %21, %cst_17 {dimension_numbers = #tpu.dot_dimension_numbers<[1], [0], [0], [1], [0, 0, 1, 1], [], []>} : vector<16x128xbf16>, vector<128x128xbf16>, vector<16x128xf32> -> vector<16x128xf32>
    %23 = vector.broadcast %2 : vector<1x128xf32> to vector<16x128xf32>
    %24 = arith.addf %22, %23 : vector<16x128xf32>
    %cst_18 = arith.constant 0.000000e+00 : f32
    %25 = vector.broadcast %cst_18 : f32 to vector<16x128xf32>
    %26 = arith.maximumf %24, %25 : vector<16x128xf32>
    %27 = arith.truncf %26 : vector<16x128xf32> to vector<16x128xbf16>
    %c2_19 = arith.constant 2 : index
    %c0_20 = arith.constant 0 : index
    %c0_21 = arith.constant 0 : index
    %28 = vector.load %arg3[%c2_19, %c0_20, %c0_21] : memref<3x128x128xbf16, #tpu.memory_space<vmem>>, vector<1x128x128xbf16>
    %29 = vector.shape_cast %28 : vector<1x128x128xbf16> to vector<128x128xbf16>
    %cst_22 = arith.constant dense<0.000000e+00> : vector<16x128xf32>
    %30 = tpu.matmul %27, %29, %cst_22 {dimension_numbers = #tpu.dot_dimension_numbers<[1], [0], [0], [1], [0, 0, 1, 1], [], []>} : vector<16x128xbf16>, vector<128x128xbf16>, vector<16x128xf32> -> vector<16x128xf32>
    %31 = vector.broadcast %3 : vector<1x128xf32> to vector<16x128xf32>
    %32 = arith.addf %30, %31 : vector<16x128xf32>
    %33 = vector.extract_strided_slice %32 {offsets = [0, 0], sizes = [16, 1], strides = [1, 1]} : vector<16x128xf32> to vector<16x1xf32>
    %34 = vector.extract_strided_slice %32 {offsets = [0, 127], sizes = [16, 1], strides = [1, 1]} : vector<16x128xf32> to vector<16x1xf32>
    %35 = arith.subf %33, %34 : vector<16x1xf32>
    %36 = vector.broadcast %35 : vector<16x1xf32> to vector<16x128xf32>
    %37 = arith.addf %32, %36 : vector<16x128xf32>
    %c0_23 = arith.constant 0 : index
    %c0_24 = arith.constant 0 : index
    %38 = vector.load %arg5[%c0_23, %c0_24] : memref<16x128xf32, #tpu.memory_space<vmem>>, vector<16x128xf32>
    tpu.vector_store %arg5[%c0_23, %c0_24], %37 {strides = array<i32>} : memref<16x128xf32, #tpu.memory_space<vmem>>, vector<16x128xf32>,
    return
  }
  func.func @transform_0(%arg0: i32) -> (i32, i32) {
    %c0_i32 = arith.constant 0 : i32
    %c0_i32_0 = arith.constant 0 : i32
    return %arg0, %c0_i32 : i32, i32
  }
  func.func @transform_1(%arg0: i32) -> (i32, i32) {
    %c0_i32 = arith.constant 0 : i32
    %c0_i32_0 = arith.constant 0 : i32
    %c0_i32_1 = arith.constant 0 : i32
    return %c0_i32, %c0_i32_0 : i32, i32
  }
  func.func @transform_2(%arg0: i32) -> (i32, i32, i32) {
    %c0_i32 = arith.constant 0 : i32
    %c0_i32_0 = arith.constant 0 : i32
    %c0_i32_1 = arith.constant 0 : i32
    %c0_i32_2 = arith.constant 0 : i32
    return %c0_i32, %c0_i32_0, %c0_i32_1 : i32, i32, i32
  }
  func.func @transform_3(%arg0: i32) -> (i32, i32) {
    %c0_i32 = arith.constant 0 : i32
    %c0_i32_0 = arith.constant 0 : i32
    %c0_i32_1 = arith.constant 0 : i32
    return %c0_i32, %c0_i32_0 : i32, i32
  }
  func.func @transform_4(%arg0: i32) -> (i32, i32) {
    %c0_i32 = arith.constant 0 : i32
    %c0_i32_0 = arith.constant 0 : i32
    return %arg0, %c0_i32 : i32, i32
  }
}

</mosaic_0001>

<bundles_post_ra>
// kernel: tpu_custom_call.1
= control target key start
LH: loop header
LB: loop body
LE: loop exit
PB: predicated region body
PF: predicated region fallthrough
CT: control target
= control target key end

     0   :  { %9 = vsyncpa [#allocation3], 0  ;;  %s738_s0 = inlined_call_operand.hbm [shape: bf16[16,16], index: 0, kind: input, shape index: {}]   ;;  %s739_s1 = inlined_call_operand.hbm [shape: bf16[16,128], index: 1, kind: input, shape index: {}]   ;;  %s740_s2 = inlined_call_operand.hbm [shape: bf16[3,128,128], index: 2, kind: input, shape index: {}]   ;;  %s741_s3 = inlined_call_operand.hbm [shape: f32[8,128], index: 3, kind: input, shape index: {}]   ;;  %s742_s4 = inlined_call_operand.hbm [shape: f32[16,128], index: 4, kind: output, shape index: {}]  }
   0x1   :  { %10 = vsyncpa [#allocation6], 0 }
   0x2   :  { %11 = vsyncpa [#allocation9], 0 }
   0x3   :  { %12 = vsyncpa [#allocation4], 0  ;;  %s30_s17 = sshll.u32 %s739_s1, 4  ;;  %s687_s18 = smov [#allocation5]   ;;  %s31_s17 = int_to_ptr.hbm [resolvable:$true] %s30_s17 }
   0x4   :  { %s32_s19 = sshll.u32 %s687_s18, 4  ;;  %s17_s22 = sshll.u32 %s738_s0, 4  ;;  %s33_s19 = int_to_ptr.vmem [resolvable:$true] %s32_s19  ;;  %s18_s22 = int_to_ptr.hbm [resolvable:$true] %s17_s22 }
   0x5   :  { %s688_s23 = smov 64   ;;  %s689_s24 = smov 4  }
   0x6   :  { %38 = dma.hbm_to_vmem [thread:$0]  %s31_s17, 128, %s33_s19, [#allocation6], %s688_s23, %s688_s23, %s689_s24  }
   0x7   :  { %s690_s25 = smov [#allocation2]   ;;  %s43_s29 = sshll.u32 %s740_s2, 4  ;;  %s44_s29 = int_to_ptr.hbm [resolvable:$true] %s43_s29 }
   0x8   :  { %s19_s26 = sshll.u32 %s690_s25, 4  ;;  %s57_s5 = sshll.u32 %s741_s3, 4  ;;  %s20_s26 = int_to_ptr.vmem [resolvable:$true] %s19_s26  ;;  %s58_s5 = int_to_ptr.hbm [resolvable:$true] %s57_s5 }
   0x9   :  { %25 = dma.hbm_to_vmem [thread:$0]  %s18_s22, 128, %s20_s26, [#allocation3], %s688_s23, %s688_s23, %s689_s24  }
   0xa   :  { %s691_s6 = smov [#allocation7]   ;;  %s692_s0 = smov [#allocation8]  }
   0xb   :  { %s45_s7 = sshll.u32 %s691_s6, 4  ;;  %s59_s8 = sshll.u32 %s692_s0, 4  ;;  %s46_s7 = int_to_ptr.vmem [resolvable:$true] %s45_s7  ;;  %s60_s8 = int_to_ptr.vmem [resolvable:$true] %s59_s8 }
   0xc   :  { %51 = dma.hbm_to_vmem [thread:$0]  %s44_s29, 3072, %s46_s7, [#allocation6], %s688_s23, %s688_s23, %s689_s24  }
   0xd   :  { %62 = dma.hbm_to_vmem [thread:$0]  %s58_s5, 128, %s60_s8, [#allocation9]  }
   0xe   :  { %679 = dma.done.wait [#allocation3], 128  }
   0xf   :  { %680 = vsyncadd [#allocation3], 4294967168 }
  0x10   :  { %681 = dma.done.wait [#allocation6], 3200  }
  0x11   :  { %682 = vsyncadd [#allocation6], 4294964096 }
  0x12   :  { %683 = dma.done.wait [#allocation9], 128  }
  0x13   :  { %684 = vsyncadd [#allocation9], 4294967168  ;;  %v517_v0 = vld [vmem:[#allocation5] sm:$0xff]  ;;  %v516_v2 = vld [vmem:[#allocation2] sm:$0xff]  ;;  %vm100_vm0 = vcmask 130048   ;;  %s693_s2 = smov 1  }
  0x14   :  { %v525_v1 = vld [vmem:[#allocation7 + $0x38] sm:$0xff]  ;;  %111 = vmatpush.bf16.msra.mxu0 %v517_v0  ;;  %v524_v3 = vld [vmem:[#allocation7 + $0x30] sm:$0xff]  ;;  %v523_v4 = vld [vmem:[#allocation7 + $0x28] sm:$0xff]  ;;  %v694_v55 = vmov 0   ;;  %s695_s3 = smov [#allocation10]   ;;  %s396_s12 = sshll.u32 %s742_s4, 4  ;;  %s397_s12 = int_to_ptr.hbm [resolvable:$true] %s396_s12 }
  0x15   :  { %186 = vmatpush.bf16.msra.mxu1 %v525_v1  ;;  %v522_v5 = vld [vmem:[#allocation7 + $0x20] sm:$0xff]  ;;  %v521_v6 = vld [vmem:[#allocation7 + $0x18] sm:$0xff]  ;;  %v520_v7 = vld [vmem:[#allocation7 + $0x10] sm:$0xff]  ;;  %553 = vset.pattern.permute.xlu1 %v694_v55  ;;  %s394_s9 = sshll.u32 %s695_s3, 4  ;;  %s696_s13 = smov 128   ;;  %s395_s9 = int_to_ptr.vmem [resolvable:$true] %s394_s9 }
  0x16   :  { %v519_v8 = vld [vmem:[#allocation7 + $0x8] sm:$0xff]  ;;  %v518_v9 = vld [vmem:[#allocation7] sm:$0xff]  ;;  %v533_v10 = vld [vmem:[#allocation7 + $0x78] sm:$0xff]  ;;  %554 = vset.pattern.permute.xlu0 %v694_v55  ;;  %s697_s14 = smov 8  }
  0x17   :  { %419 = vmatmul.msk.bf16.vlgmr.msra.gmra.mxu0 %vm100_vm0, %v516_v2  ;;  %269 = vmatpush.bf16.msra.mxu2 %v533_v10  ;;  %v532_v11 = vld [vmem:[#allocation7 + $0x70] sm:$0xff]  ;;  %v531_v12 = vld [vmem:[#allocation7 + $0x68] sm:$0xff]  ;;  %v530_v13 = vld [vmem:[#allocation7 + $0x60] sm:$0xff] }
  0x18   :  { %v555_v15 = vld [vmem:[#allocation8] ss:$0 sm:$0xff]  ;;  %v529_v22 = vld [vmem:[#allocation7 + $0x58] sm:$0xff]  ;;  %v528_v23 = vld [vmem:[#allocation7 + $0x50] sm:$0xff] }
  0x19   :  { %187 = vmatpush.bf16.msra.mxu1 %v524_v3  ;;  %v527_v24 = vld [vmem:[#allocation7 + $0x48] sm:$0xff]  ;;  %v526_v25 = vld [vmem:[#allocation7 + $0x40] sm:$0xff]  ;;  %v541_v26 = vld [vmem:[#allocation7 + $0xb8] sm:$0xff] }
  0x1a   :  { %352 = vmatpush.bf16.msra.mxu3 %v541_v26  ;;  %v540_v27 = vld [vmem:[#allocation7 + $0xb0] sm:$0xff]  ;;  %v539_v28 = vld [vmem:[#allocation7 + $0xa8] sm:$0xff]  ;;  %v538_v29 = vld [vmem:[#allocation7 + $0xa0] sm:$0xff] }
  0x1b   :  { %270 = vmatpush.bf16.msra.mxu2 %v532_v11  ;;  %v556_v31 = vld [vmem:[#allocation8 + $0x1] ss:$0 sm:$0xff]  ;;  %v537_v38 = vld [vmem:[#allocation7 + $0x98] sm:$0xff]  ;;  %v536_v39 = vld [vmem:[#allocation7 + $0x90] sm:$0xff] }
  0x1c   :  { %v535_v40 = vld [vmem:[#allocation7 + $0x88] sm:$0xff]  ;;  %v534_v41 = vld [vmem:[#allocation7 + $0x80] sm:$0xff] }
  0x1d   :  { %188 = vmatpush.bf16.msra.mxu1 %v523_v4  ;;  %v557_v43 = vld [vmem:[#allocation8 + $0x2] ss:$0 sm:$0xff]  ;;  %v558_v50 = vld [vmem:[#allocation8 + $0x3] ss:$0 sm:$0xff] }
  0x1e   :  { %353 = vmatpush.bf16.msra.mxu3 %v540_v27 }
  0x1f   :  { %271 = vmatpush.bf16.msra.mxu2 %v531_v12 }
  0x21   :  { %189 = vmatpush.bf16.msra.mxu1 %v522_v5 }
  0x22   :  { %354 = vmatpush.bf16.msra.mxu3 %v539_v28 }
  0x23   :  { %272 = vmatpush.bf16.msra.mxu2 %v530_v13 }
  0x25   :  { %190 = vmatpush.bf16.msra.mxu1 %v521_v6 }
  0x26   :  { %355 = vmatpush.bf16.msra.mxu3 %v538_v29 }
  0x27   :  { %273 = vmatpush.bf16.msra.mxu2 %v529_v22 }
  0x29   :  { %191 = vmatpush.bf16.msra.mxu1 %v520_v7 }
  0x2a   :  { %356 = vmatpush.bf16.msra.mxu3 %v537_v38 }
  0x2b   :  { %274 = vmatpush.bf16.msra.mxu2 %v528_v23 }
  0x2d   :  { %192 = vmatpush.bf16.msra.mxu1 %v519_v8 }
  0x2e   :  { %357 = vmatpush.bf16.msra.mxu3 %v536_v39 }
  0x2f   :  { %275 = vmatpush.bf16.msra.mxu2 %v527_v24 }
  0x31   :  { %193 = vmatpush.bf16.msra.mxu1 %v518_v9 }
  0x32   :  { %358 = vmatpush.bf16.msra.mxu3 %v535_v40 }
  0x33   :  { %276 = vmatpush.bf16.msra.mxu2 %v526_v25 }
  0x36   :  { %359 = vmatpush.bf16.msra.mxu3 %v534_v41 }
  0x94   :  { %v113_v14 = vpop.f32.mrf.mxu0 }
  0x95   :  { %v114_v16 = vadd.f32 %v555_v15, %v113_v14 }
  0x97   :  { %v118_v19 = vmax.f32 %v114_v16, 0.0 }
  0x9c   :  { %v115_v17 = vpop.f32.mrf.mxu0 }
  0x9d   :  { %v116_v18 = vadd.f32 %v555_v15, %v115_v17 }
  0x9f   :  { %v119_v20 = vmax.f32 %v116_v18, 0.0 }
  0xa1   :  { %v120_v21 = vpack.c.bf16 %v119_v20, %v118_v19 }
  0xa3   :  { %194 = vmatmul.bf16.vlgmr.msra.gmra.mxu1 %v120_v21 }
 0x120   :  { %v195_v30 = vpop.f32.mrf.mxu1 }
 0x121   :  { %v196_v32 = vadd.f32 %v556_v31, %v195_v30 }
 0x123   :  { %v200_v35 = vmax.f32 %v196_v32, 0.0 }
 0x128   :  { %v197_v33 = vpop.f32.mrf.mxu1 }
 0x129   :  { %v198_v34 = vadd.f32 %v556_v31, %v197_v33 }
 0x12b   :  { %v201_v36 = vmax.f32 %v198_v34, 0.0 }
 0x12d   :  { %v202_v37 = vpack.c.bf16 %v201_v36, %v200_v35 }
 0x12f   :  { %277 = vmatmul.bf16.vlgmr.msra.gmra.mxu2 %v202_v37 }
 0x1b2   :  { %v278_v42 = vpop.f32.mrf.mxu2 }
 0x1b3   :  { %v279_v44 = vadd.f32 %v557_v43, %v278_v42 }
 0x1b5   :  { %v283_v47 = vmax.f32 %v279_v44, 0.0 }
 0x1ba   :  { %v280_v45 = vpop.f32.mrf.mxu2 }
 0x1bb   :  { %v281_v46 = vadd.f32 %v557_v43, %v280_v45 }
 0x1bd   :  { %v284_v48 = vmax.f32 %v281_v46, 0.0 }
 0x1bf   :  { %v285_v49 = vpack.c.bf16 %v284_v48, %v283_v47 }
 0x1c1   :  { %360 = vmatmul.bf16.vlgmr.msra.gmra.mxu3 %v285_v49 }
 0x244   :  { %v361_v51 = vpop.f32.mrf.mxu3 }
 0x245   :  { %v362_v52 = vadd.f32 %v558_v50, %v361_v51 }
 0x247   :  { %368 = vrot.lane.b32.xlu0 %v362_v52, %s693_s2 }
 0x24c   :  { %v363_v53 = vpop.f32.mrf.mxu3 }
 0x24d   :  { %v364_v54 = vadd.f32 %v558_v50, %v363_v53 }
 0x24f   :  { %370 = vrot.lane.b32.xlu0 %v364_v54, %s693_s2 }
 0x2b9   :  { %v369_v56 = vpop.permute.xlu0 %368 }
 0x2ba   :  { %v374_v57 = vsub.f32 %v362_v52, %v369_v56 }
 0x2bc   :  { %378 = vperm.xlu1 %553, %v374_v57  }
 0x2c1   :  { %v371_v58 = vpop.permute.xlu0 %370 }
 0x2c2   :  { %v375_v59 = vsub.f32 %v364_v54, %v371_v58 }
 0x2c4   :  { %383 = vperm.xlu1 %553, %v375_v59  }
 0x32e   :  { %v379_v60 = vpop.permute.xlu1 %378 }
 0x32f   :  { %v386_v61 = vadd.f32 %v379_v60, %v362_v52 }
 0x331   :  { %388 = vst [vmem:[#allocation10] sm:$0xff] %v386_v61 }
 0x336   :  { %v384_v62 = vpop.permute.xlu1 %383 }
 0x337   :  { %v387_v63 = vadd.f32 %v384_v62, %v364_v54 }
 0x339   :  { %389 = vst [vmem:[#allocation10 + $0x8] sm:$0xff] %v387_v63 }
 0x33a   :  { %402 = dma.vmem_to_hbm [thread:$0]  %s395_s9, 256, %s397_s12, [#allocation4], %s696_s13, %s696_s13, %s697_s14  }
 0x33b   :  { %685 = dma.done.wait [#allocation4], 256  }
 0x33c   :  { %686 = vsyncadd [#allocation4], 4294967040 }
 0x33d   :  { %407 = vsyncpa [#allocation3], 1 }
 0x33e   :  { %408 = vsyncpa [#allocation6], 1 }
 0x33f   :  { %409 = vsyncpa [#allocation9], 1 }
 0x340   :  { %410 = vsyncpa [#allocation4], 1 }

</bundles_post_ra>
